<compile_context>
chip_gen: v7x
topology: tpu7x:2x2x1
jax: 0.10.0
libtpu: 0.0.40
codegen_flags: <defaults>
</compile_context>

<pallas_src>
import functools

import jax
import jax.numpy as jnp
from jax import lax
from jax.experimental import pallas as pl
from jax.experimental.pallas import tpu as pltpu


def _gelu_tanh(v):
    # tanh-approximate GELU (VPU + EUP only).
    c = 0.7978845608028654  # sqrt(2/pi)
    return 0.5 * v * (1.0 + jnp.tanh(c * (v + 0.044715 * v * v * v)))


def _mixer_block_kernel(x_ref, ln_g_ref, ln_b_ref,
                        w0p_ref, b0p_ref, w1p_ref, b1p_ref,
                        w0c_ref, b0c_ref, w1c_ref, b1c_ref,
                        o_ref, *, eps):
    # x_ref:   (1, S, C)  one batch element, channels-last (lane dim = C)
    # ln_g/b:  (1, C)     shared LayerNorm affine (module reuses one LN twice)
    # w0p:     (2S, S)    token-mix Dense0 weight (torch (out,in) layout, as-is)
    # b0p:     (2S, 1)
    # w1p:     (S, 2S)    token-mix Dense1 weight (as-is)
    # b1p:     (S, 1)
    # w0c:     (C, 2C)    channel-mix Dense0 weight, pre-transposed
    # b0c:     (1, 2C)
    # w1c:     (2C, C)    channel-mix Dense1 weight, pre-transposed
    # b1c:     (1, C)
    # o_ref:   (1, S, C)
    x = x_ref[0].astype(jnp.float32)                       # (S, C)
    gamma = ln_g_ref[...]
    beta = ln_b_ref[...]

    def layer_norm(v):                                     # LN over C (lanes)
        mu = jnp.mean(v, axis=-1, keepdims=True)
        d = v - mu
        var = jnp.mean(d * d, axis=-1, keepdims=True)
        return d * lax.rsqrt(var + eps) * gamma + beta

    # ---- token mixing: MLP over the patch axis S, computed in transposed form
    # so C stays on the lane axis and the two permutes vanish. ----
    y = layer_norm(x)                                                      # (S, C)
    h = jnp.dot(w0p_ref[...], y,
                preferred_element_type=jnp.float32) + b0p_ref[...]         # (2S, C)
    tok = jnp.dot(w1p_ref[...], _gelu_tanh(h),
                  preferred_element_type=jnp.float32) + b1p_ref[...]       # (S, C)
    x1 = x + tok                                                           # residual 1

    # ---- channel mixing: MLP over C (already the lane axis). ----
    y2 = layer_norm(x1)                                                    # (S, C)
    h2 = jnp.dot(y2, w0c_ref[...],
                 preferred_element_type=jnp.float32) + b0c_ref[...]        # (S, 2C)
    chan = jnp.dot(_gelu_tanh(h2), w1c_ref[...],
                   preferred_element_type=jnp.float32) + b1c_ref[...]      # (S, C)

    o_ref[0] = (x1 + chan).astype(o_ref.dtype)                             # residual 2


def mixer_block(x, params, *, eps=1e-5):
    """MixerBlock forward for x of shape (B, Patch_size, Dim_size)."""
    nB, nS, nC = x.shape
    hp = params["w0p"].shape[0]     # Patch_size * 2
    hc = params["w0c"].shape[0]     # Dim_size * 2
    assert params["w0p"].shape == (hp, nS) and params["w1p"].shape == (nS, hp)
    assert params["w0c"].shape == (hc, nC) and params["w1c"].shape == (nC, hc)

    f32 = jnp.float32
    # One-time tiny reshapes / transposes, outside the hot path:
    ln_g = params["ln_g"].reshape(1, nC).astype(f32)
    ln_b = params["ln_b"].reshape(1, nC).astype(f32)
    w0p = params["w0p"].astype(f32)                    # (2S, S), used on the left
    b0p = params["b0p"].reshape(hp, 1).astype(f32)
    w1p = params["w1p"].astype(f32)                    # (S, 2S), used on the left
    b1p = params["b1p"].reshape(nS, 1).astype(f32)
    w0c = params["w0c"].T.astype(f32)                  # (C, 2C)
    b0c = params["b0c"].reshape(1, hc).astype(f32)
    w1c = params["w1c"].T.astype(f32)                  # (2C, C)
    b1c = params["b1c"].reshape(1, nC).astype(f32)

    kernel = functools.partial(_mixer_block_kernel, eps=eps)
    const2 = lambda b: (0, 0)

    return pl.pallas_call(
        kernel,
        out_shape=jax.ShapeDtypeStruct((nB, nS, nC), x.dtype),
        grid_spec=pltpu.PrefetchScalarGridSpec(
            num_scalar_prefetch=0,
            grid=(nB,),
            in_specs=[
                pl.BlockSpec((1, nS, nC), lambda b: (b, 0, 0)),   # x
                pl.BlockSpec((1, nC), const2),                    # LN gamma
                pl.BlockSpec((1, nC), const2),                    # LN beta
                pl.BlockSpec((hp, nS), const2),                   # w0p
                pl.BlockSpec((hp, 1), const2),                    # b0p
                pl.BlockSpec((nS, hp), const2),                   # w1p
                pl.BlockSpec((nS, 1), const2),                    # b1p
                pl.BlockSpec((nC, hc), const2),                   # w0c^T
                pl.BlockSpec((1, hc), const2),                    # b0c
                pl.BlockSpec((hc, nC), const2),                   # w1c^T
                pl.BlockSpec((1, nC), const2),                    # b1c
            ],
            out_specs=pl.BlockSpec((1, nS, nC), lambda b: (b, 0, 0)),
        ),
        compiler_params=pltpu.CompilerParams(
            dimension_semantics=("parallel",)),
    )(x, ln_g, ln_b, w0p, b0p, w1p, b1p, w0c, b0c, w1c, b1c)


def _reference(x, params, *, eps=1e-5):
    """Pure-JAX mirror of the PyTorch MixerBlock forward (exact erf GELU)."""
    hi = jax.lax.Precision.HIGHEST

    def gelu(v):
        return 0.5 * v * (1.0 + jax.scipy.special.erf(v / jnp.sqrt(2.0)))

    def ln(v):
        mu = jnp.mean(v, axis=-1, keepdims=True)
        var = jnp.mean((v - mu) ** 2, axis=-1, keepdims=True)
        return (v - mu) / jnp.sqrt(var + eps) * params["ln_g"] + params["ln_b"]

    def mlp(v, w0, b0, w1, b1):
        h = gelu(jnp.matmul(v, w0.T, precision=hi) + b0)
        return jnp.matmul(h, w1.T, precision=hi) + b1

    y = ln(x)
    y = jnp.swapaxes(y, 1, 2)                                       # (B, C, S)
    y = mlp(y, params["w0p"], params["b0p"], params["w1p"], params["b1p"])
    y = jnp.swapaxes(y, 1, 2)                                       # (B, S, C)
    x1 = x + y
    y2 = ln(x1)
    return x1 + mlp(y2, params["w0c"], params["b0c"], params["w1c"], params["b1c"])


if __name__ == "__main__":
    # MixerBlock(Dim_size=128, Patch_size=16) on x of shape (B, S, C) = (2, 16, 128)
    nB, nS, nC = 2, 16, 128
    hp, hc = nS * 2, nC * 2

    key = jax.random.PRNGKey(0)
    ks = jax.random.split(key, 11)

    def lin_init(kw, kb, fan_out, fan_in):
        bound = 1.0 / float(fan_in) ** 0.5
        w = jax.random.uniform(kw, (fan_out, fan_in), jnp.float32, -bound, bound)
        b = jax.random.uniform(kb, (fan_out,), jnp.float32, -bound, bound)
        return w, b

    x = jax.random.normal(ks[0], (nB, nS, nC), dtype=jnp.float32)
    w0p, b0p = lin_init(ks[1], ks[2], hp, nS)       # MlpBlock_Patches.Dense0
    w1p, b1p = lin_init(ks[3], ks[4], nS, hp)       # MlpBlock_Patches.Dense1
    w0c, b0c = lin_init(ks[5], ks[6], hc, nC)       # MlpBlock_Channels.Dense0
    w1c, b1c = lin_init(ks[7], ks[8], nC, hc)       # MlpBlock_Channels.Dense1
    ln_g = 1.0 + 0.1 * jax.random.normal(ks[9], (nC,), dtype=jnp.float32)
    ln_b = 0.1 * jax.random.normal(ks[10], (nC,), dtype=jnp.float32)

    params = dict(ln_g=ln_g, ln_b=ln_b,
                  w0p=w0p, b0p=b0p, w1p=w1p, b1p=b1p,
                  w0c=w0c, b0c=b0c, w1c=w1c, b1c=b1c)

    out = mixer_block(x, params)
    out = jax.block_until_ready(out)

    ref = _reference(x, params)
    assert out.shape == (nB, nS, nC)
    max_err = float(jnp.max(jnp.abs(out - ref)))
    # Tolerance absorbs the tanh-vs-erf GELU difference (<~1e-3 per element).
    assert jnp.allclose(out, ref, atol=1e-2, rtol=1e-2), (
        f"mismatch vs reference: max abs err = {max_err}")
    print("KERNEL_OK")
</pallas_src>

<mosaic_0001>
module attributes {stable_mosaic.version = 11 : i64} {
  func.func @_mixer_block_kernel(%arg0: i32, %arg1: memref<1x16x128xf32, #tpu.memory_space<vmem>>, %arg2: memref<1x128xf32, #tpu.memory_space<vmem>>, %arg3: memref<1x128xf32, #tpu.memory_space<vmem>>, %arg4: memref<32x16xf32, #tpu.memory_space<vmem>>, %arg5: memref<32x1xf32, #tpu.memory_space<vmem>>, %arg6: memref<16x32xf32, #tpu.memory_space<vmem>>, %arg7: memref<16x1xf32, #tpu.memory_space<vmem>>, %arg8: memref<128x256xf32, #tpu.memory_space<vmem>>, %arg9: memref<1x256xf32, #tpu.memory_space<vmem>>, %arg10: memref<256x128xf32, #tpu.memory_space<vmem>>, %arg11: memref<1x128xf32, #tpu.memory_space<vmem>>, %arg12: memref<1x16x128xf32, #tpu.memory_space<vmem>>) attributes {dimension_semantics = [#tpu.dimension_semantics<parallel>], iteration_bounds = array<i64: 2>, scalar_prefetch = 0 : i64, scratch_operands = 0 : i64, tpu.core_type = #tpu.core_type<tc>, window_params = [{transform_indices = @transform_0, window_bounds = array<i64: 1, 16, 128>}, {pipeline_mode = #tpu.pipeline_mode<synchronous>, transform_indices = @transform_1, window_bounds = array<i64: 1, 128>}, {pipeline_mode = #tpu.pipeline_mode<synchronous>, transform_indices = @transform_2, window_bounds = array<i64: 1, 128>}, {pipeline_mode = #tpu.pipeline_mode<synchronous>, transform_indices = @transform_3, window_bounds = array<i64: 32, 16>}, {pipeline_mode = #tpu.pipeline_mode<synchronous>, transform_indices = @transform_4, window_bounds = array<i64: 32, 1>}, {pipeline_mode = #tpu.pipeline_mode<synchronous>, transform_indices = @transform_5, window_bounds = array<i64: 16, 32>}, {pipeline_mode = #tpu.pipeline_mode<synchronous>, transform_indices = @transform_6, window_bounds = array<i64: 16, 1>}, {pipeline_mode = #tpu.pipeline_mode<synchronous>, transform_indices = @transform_7, window_bounds = array<i64: 128, 256>}, {pipeline_mode = #tpu.pipeline_mode<synchronous>, transform_indices = @transform_8, window_bounds = array<i64: 1, 256>}, {pipeline_mode = #tpu.pipeline_mode<synchronous>, transform_indices = @transform_9, window_bounds = array<i64: 256, 128>}, {pipeline_mode = #tpu.pipeline_mode<synchronous>, transform_indices = @transform_10, window_bounds = array<i64: 1, 128>}, {transform_indices = @transform_11, window_bounds = array<i64: 1, 16, 128>}]} {
    %c0 = arith.constant 0 : index
    %c0_0 = arith.constant 0 : index
    %c0_1 = arith.constant 0 : index
    %0 = vector.load %arg1[%c0, %c0_0, %c0_1] : memref<1x16x128xf32, #tpu.memory_space<vmem>>, vector<1x16x128xf32>
    %1 = vector.shape_cast %0 : vector<1x16x128xf32> to vector<16x128xf32>
    %c0_2 = arith.constant 0 : index
    %c0_3 = arith.constant 0 : index
    %2 = vector.load %arg2[%c0_2, %c0_3] : memref<1x128xf32, #tpu.memory_space<vmem>>, vector<1x128xf32>
    %c0_4 = arith.constant 0 : index
    %c0_5 = arith.constant 0 : index
    %3 = vector.load %arg3[%c0_4, %c0_5] : memref<1x128xf32, #tpu.memory_space<vmem>>, vector<1x128xf32>
    %cst = arith.constant dense<0.000000e+00> : vector<16xf32>
    %4 = vector.multi_reduction <add>, %1, %cst [1] : vector<16x128xf32> to vector<16xf32>
    %5 = vector.shape_cast %4 : vector<16xf32> to vector<16x1xf32>
    %cst_6 = arith.constant 1.280000e+02 : f32
    %6 = vector.broadcast %cst_6 : f32 to vector<16x1xf32>
    %7 = arith.divf %5, %6 : vector<16x1xf32>
    %8 = vector.broadcast %7 : vector<16x1xf32> to vector<16x128xf32>
    %9 = arith.subf %1, %8 : vector<16x128xf32>
    %10 = arith.mulf %9, %9 : vector<16x128xf32>
    %cst_7 = arith.constant dense<0.000000e+00> : vector<16xf32>
    %11 = vector.multi_reduction <add>, %10, %cst_7 [1] : vector<16x128xf32> to vector<16xf32>
    %12 = vector.shape_cast %11 : vector<16xf32> to vector<16x1xf32>
    %cst_8 = arith.constant 1.280000e+02 : f32
    %13 = vector.broadcast %cst_8 : f32 to vector<16x1xf32>
    %14 = arith.divf %12, %13 : vector<16x1xf32>
    %cst_9 = arith.constant 9.99999974E-6 : f32
    %15 = vector.broadcast %cst_9 : f32 to vector<16x1xf32>
    %16 = arith.addf %14, %15 : vector<16x1xf32>
    %17 = math.rsqrt %16 : vector<16x1xf32>
    %18 = vector.broadcast %17 : vector<16x1xf32> to vector<16x128xf32>
    %19 = arith.mulf %9, %18 : vector<16x128xf32>
    %20 = vector.broadcast %2 : vector<1x128xf32> to vector<16x128xf32>
    %21 = arith.mulf %19, %20 : vector<16x128xf32>
    %22 = vector.broadcast %3 : vector<1x128xf32> to vector<16x128xf32>
    %23 = arith.addf %21, %22 : vector<16x128xf32>
    %c0_10 = arith.constant 0 : index
    %c0_11 = arith.constant 0 : index
    %24 = vector.load %arg4[%c0_10, %c0_11] : memref<32x16xf32, #tpu.memory_space<vmem>>, vector<32x16xf32>
    %cst_12 = arith.constant dense<0.000000e+00> : vector<32x128xf32>
    %25 = tpu.matmul %24, %23, %cst_12 {dimension_numbers = #tpu.dot_dimension_numbers<[1], [0], [0], [1], [0, 0, 1, 1], [], []>} : vector<32x16xf32>, vector<16x128xf32>, vector<32x128xf32> -> vector<32x128xf32>
    %c0_13 = arith.constant 0 : index
    %c0_14 = arith.constant 0 : index
    %26 = vector.load %arg5[%c0_13, %c0_14] : memref<32x1xf32, #tpu.memory_space<vmem>>, vector<32x1xf32>
    %27 = vector.broadcast %26 : vector<32x1xf32> to vector<32x128xf32>
    %28 = arith.addf %25, %27 : vector<32x128xf32>
    %c0_15 = arith.constant 0 : index
    %c0_16 = arith.constant 0 : index
    %29 = vector.load %arg6[%c0_15, %c0_16] : memref<16x32xf32, #tpu.memory_space<vmem>>, vector<16x32xf32>
    %cst_17 = arith.constant 5.000000e-01 : f32
    %30 = vector.broadcast %cst_17 : f32 to vector<32x128xf32>
    %31 = arith.mulf %30, %28 : vector<32x128xf32>
    %cst_18 = arith.constant 4.471500e-02 : f32
    %32 = vector.broadcast %cst_18 : f32 to vector<32x128xf32>
    %33 = arith.mulf %32, %28 : vector<32x128xf32>
    %34 = arith.mulf %33, %28 : vector<32x128xf32>
    %35 = arith.mulf %34, %28 : vector<32x128xf32>
    %36 = arith.addf %28, %35 : vector<32x128xf32>
    %cst_19 = arith.constant 0.797884583 : f32
    %37 = vector.broadcast %cst_19 : f32 to vector<32x128xf32>
    %38 = arith.mulf %37, %36 : vector<32x128xf32>
    %39 = math.tanh %38 : vector<32x128xf32>
    %cst_20 = arith.constant 1.000000e+00 : f32
    %40 = vector.broadcast %cst_20 : f32 to vector<32x128xf32>
    %41 = arith.addf %40, %39 : vector<32x128xf32>
    %42 = arith.mulf %31, %41 : vector<32x128xf32>
    %cst_21 = arith.constant dense<0.000000e+00> : vector<16x128xf32>
    %43 = tpu.matmul %29, %42, %cst_21 {dimension_numbers = #tpu.dot_dimension_numbers<[1], [0], [0], [1], [0, 0, 1, 1], [], []>} : vector<16x32xf32>, vector<32x128xf32>, vector<16x128xf32> -> vector<16x128xf32>
    %c0_22 = arith.constant 0 : index
    %c0_23 = arith.constant 0 : index
    %44 = vector.load %arg7[%c0_22, %c0_23] : memref<16x1xf32, #tpu.memory_space<vmem>>, vector<16x1xf32>
    %45 = vector.broadcast %44 : vector<16x1xf32> to vector<16x128xf32>
    %46 = arith.addf %43, %45 : vector<16x128xf32>
    %47 = arith.addf %1, %46 : vector<16x128xf32>
    %cst_24 = arith.constant dense<0.000000e+00> : vector<16xf32>
    %48 = vector.multi_reduction <add>, %47, %cst_24 [1] : vector<16x128xf32> to vector<16xf32>
    %49 = vector.shape_cast %48 : vector<16xf32> to vector<16x1xf32>
    %cst_25 = arith.constant 1.280000e+02 : f32
    %50 = vector.broadcast %cst_25 : f32 to vector<16x1xf32>
    %51 = arith.divf %49, %50 : vector<16x1xf32>
    %52 = vector.broadcast %51 : vector<16x1xf32> to vector<16x128xf32>
    %53 = arith.subf %47, %52 : vector<16x128xf32>
    %54 = arith.mulf %53, %53 : vector<16x128xf32>
    %cst_26 = arith.constant dense<0.000000e+00> : vector<16xf32>
    %55 = vector.multi_reduction <add>, %54, %cst_26 [1] : vector<16x128xf32> to vector<16xf32>
    %56 = vector.shape_cast %55 : vector<16xf32> to vector<16x1xf32>
    %cst_27 = arith.constant 1.280000e+02 : f32
    %57 = vector.broadcast %cst_27 : f32 to vector<16x1xf32>
    %58 = arith.divf %56, %57 : vector<16x1xf32>
    %cst_28 = arith.constant 9.99999974E-6 : f32
    %59 = vector.broadcast %cst_28 : f32 to vector<16x1xf32>
    %60 = arith.addf %58, %59 : vector<16x1xf32>
    %61 = math.rsqrt %60 : vector<16x1xf32>
    %62 = vector.broadcast %61 : vector<16x1xf32> to vector<16x128xf32>
    %63 = arith.mulf %53, %62 : vector<16x128xf32>
    %64 = vector.broadcast %2 : vector<1x128xf32> to vector<16x128xf32>
    %65 = arith.mulf %63, %64 : vector<16x128xf32>
    %66 = vector.broadcast %3 : vector<1x128xf32> to vector<16x128xf32>
    %67 = arith.addf %65, %66 : vector<16x128xf32>
    %c0_29 = arith.constant 0 : index
    %c0_30 = arith.constant 0 : index
    %68 = vector.load %arg8[%c0_29, %c0_30] : memref<128x256xf32, #tpu.memory_space<vmem>>, vector<128x256xf32>
    %cst_31 = arith.constant dense<0.000000e+00> : vector<16x256xf32>
    %69 = tpu.matmul %67, %68, %cst_31 {dimension_numbers = #tpu.dot_dimension_numbers<[1], [0], [0], [1], [0, 0, 1, 1], [], []>} : vector<16x128xf32>, vector<128x256xf32>, vector<16x256xf32> -> vector<16x256xf32>
    %c0_32 = arith.constant 0 : index
    %c0_33 = arith.constant 0 : index
    %70 = vector.load %arg9[%c0_32, %c0_33] : memref<1x256xf32, #tpu.memory_space<vmem>>, vector<1x256xf32>
    %71 = vector.broadcast %70 : vector<1x256xf32> to vector<16x256xf32>
    %72 = arith.addf %69, %71 : vector<16x256xf32>
    %cst_34 = arith.constant 5.000000e-01 : f32
    %73 = vector.broadcast %cst_34 : f32 to vector<16x256xf32>
    %74 = arith.mulf %73, %72 : vector<16x256xf32>
    %cst_35 = arith.constant 4.471500e-02 : f32
    %75 = vector.broadcast %cst_35 : f32 to vector<16x256xf32>
    %76 = arith.mulf %75, %72 : vector<16x256xf32>
    %77 = arith.mulf %76, %72 : vector<16x256xf32>
    %78 = arith.mulf %77, %72 : vector<16x256xf32>
    %79 = arith.addf %72, %78 : vector<16x256xf32>
    %cst_36 = arith.constant 0.797884583 : f32
    %80 = vector.broadcast %cst_36 : f32 to vector<16x256xf32>
    %81 = arith.mulf %80, %79 : vector<16x256xf32>
    %82 = math.tanh %81 : vector<16x256xf32>
    %cst_37 = arith.constant 1.000000e+00 : f32
    %83 = vector.broadcast %cst_37 : f32 to vector<16x256xf32>
    %84 = arith.addf %83, %82 : vector<16x256xf32>
    %85 = arith.mulf %74, %84 : vector<16x256xf32>
    %c0_38 = arith.constant 0 : index
    %c0_39 = arith.constant 0 : index
    %86 = vector.load %arg10[%c0_38, %c0_39] : memref<256x128xf32, #tpu.memory_space<vmem>>, vector<256x128xf32>
    %cst_40 = arith.constant dense<0.000000e+00> : vector<16x128xf32>
    %87 = tpu.matmul %85, %86, %cst_40 {dimension_numbers = #tpu.dot_dimension_numbers<[1], [0], [0], [1], [0, 0, 1, 1], [], []>} : vector<16x256xf32>, vector<256x128xf32>, vector<16x128xf32> -> vector<16x128xf32>
    %c0_41 = arith.constant 0 : index
    %c0_42 = arith.constant 0 : index
    %88 = vector.load %arg11[%c0_41, %c0_42] : memref<1x128xf32, #tpu.memory_space<vmem>>, vector<1x128xf32>
    %89 = vector.broadcast %88 : vector<1x128xf32> to vector<16x128xf32>
    %90 = arith.addf %87, %89 : vector<16x128xf32>
    %91 = arith.addf %47, %90 : vector<16x128xf32>
    %c0_43 = arith.constant 0 : index
    %c0_44 = arith.constant 0 : index
    %c0_45 = arith.constant 0 : index
    %92 = vector.load %arg12[%c0_43, %c0_44, %c0_45] : memref<1x16x128xf32, #tpu.memory_space<vmem>>, vector<1x16x128xf32>
    %93 = vector.shape_cast %92 : vector<1x16x128xf32> to vector<16x128xf32>
    %94 = vector.shape_cast %91 : vector<16x128xf32> to vector<1x16x128xf32>
    tpu.vector_store %arg12[%c0_43, %c0_44, %c0_45], %94 {strides = array<i32>} : memref<1x16x128xf32, #tpu.memory_space<vmem>>, vector<1x16x128xf32>,
    return
  }
  func.func @transform_0(%arg0: i32) -> (i32, i32, i32) {
    %c0_i32 = arith.constant 0 : i32
    %c0_i32_0 = arith.constant 0 : i32
    %c0_i32_1 = arith.constant 0 : i32
    return %arg0, %c0_i32, %c0_i32_0 : i32, i32, i32
  }
  func.func @transform_1(%arg0: i32) -> (i32, i32) {
    %c0_i32 = arith.constant 0 : i32
    %c0_i32_0 = arith.constant 0 : i32
    %c0_i32_1 = arith.constant 0 : i32
    return %c0_i32, %c0_i32_0 : i32, i32
  }
  func.func @transform_2(%arg0: i32) -> (i32, i32) {
    %c0_i32 = arith.constant 0 : i32
    %c0_i32_0 = arith.constant 0 : i32
    %c0_i32_1 = arith.constant 0 : i32
    return %c0_i32, %c0_i32_0 : i32, i32
  }
  func.func @transform_3(%arg0: i32) -> (i32, i32) {
    %c0_i32 = arith.constant 0 : i32
    %c0_i32_0 = arith.constant 0 : i32
    %c0_i32_1 = arith.constant 0 : i32
    return %c0_i32, %c0_i32_0 : i32, i32
  }
  func.func @transform_4(%arg0: i32) -> (i32, i32) {
    %c0_i32 = arith.constant 0 : i32
    %c0_i32_0 = arith.constant 0 : i32
    %c0_i32_1 = arith.constant 0 : i32
    return %c0_i32, %c0_i32_0 : i32, i32
  }
  func.func @transform_5(%arg0: i32) -> (i32, i32) {
    %c0_i32 = arith.constant 0 : i32
    %c0_i32_0 = arith.constant 0 : i32
    %c0_i32_1 = arith.constant 0 : i32
    return %c0_i32, %c0_i32_0 : i32, i32
  }
  func.func @transform_6(%arg0: i32) -> (i32, i32) {
    %c0_i32 = arith.constant 0 : i32
    %c0_i32_0 = arith.constant 0 : i32
    %c0_i32_1 = arith.constant 0 : i32
    return %c0_i32, %c0_i32_0 : i32, i32
  }
  func.func @transform_7(%arg0: i32) -> (i32, i32) {
    %c0_i32 = arith.constant 0 : i32
    %c0_i32_0 = arith.constant 0 : i32
    %c0_i32_1 = arith.constant 0 : i32
    return %c0_i32, %c0_i32_0 : i32, i32
  }
  func.func @transform_8(%arg0: i32) -> (i32, i32) {
    %c0_i32 = arith.constant 0 : i32
    %c0_i32_0 = arith.constant 0 : i32
    %c0_i32_1 = arith.constant 0 : i32
    return %c0_i32, %c0_i32_0 : i32, i32
  }
  func.func @transform_9(%arg0: i32) -> (i32, i32) {
    %c0_i32 = arith.constant 0 : i32
    %c0_i32_0 = arith.constant 0 : i32
    %c0_i32_1 = arith.constant 0 : i32
    return %c0_i32, %c0_i32_0 : i32, i32
  }
  func.func @transform_10(%arg0: i32) -> (i32, i32) {
    %c0_i32 = arith.constant 0 : i32
    %c0_i32_0 = arith.constant 0 : i32
    %c0_i32_1 = arith.constant 0 : i32
    return %c0_i32, %c0_i32_0 : i32, i32
  }
  func.func @transform_11(%arg0: i32) -> (i32, i32, i32) {
    %c0_i32 = arith.constant 0 : i32
    %c0_i32_0 = arith.constant 0 : i32
    %c0_i32_1 = arith.constant 0 : i32
    return %arg0, %c0_i32, %c0_i32_0 : i32, i32, i32
  }
}

</mosaic_0001>

<bundles_post_ra>
// kernel: tpu_custom_call.1
= control target key start
LH: loop header
LB: loop body
LE: loop exit
PB: predicated region body
PF: predicated region fallthrough
CT: control target
= control target key end

     0   :  { %16 = vsyncpa [#allocation3], 0  ;;  %s1855_s0 = inlined_call_operand.vmem [shape: f32[2,16,128], index: 0, kind: input, shape index: {}]   ;;  %s1856_s1 = inlined_call_operand.vmem [shape: f32[1,128], index: 1, kind: input, shape index: {}]   ;;  %s1857_s2 = inlined_call_operand.vmem [shape: f32[1,128], index: 2, kind: input, shape index: {}]   ;;  %s1858_s3 = inlined_call_operand.vmem [shape: f32[32,16], index: 3, kind: input, shape index: {}]   ;;  %s1859_s4 = inlined_call_operand.vmem [shape: f32[32,1], index: 4, kind: input, shape index: {}]   ;;  %s1860_s5 = inlined_call_operand.vmem [shape: f32[16,32], index: 5, kind: input, shape index: {}]   ;;  %s1861_s6 = inlined_call_operand.vmem [shape: f32[16,1], index: 6, kind: input, shape index: {}]   ;;  %s1862_s7 = inlined_call_operand.hbm [shape: f32[128,256], index: 7, kind: input, shape index: {}]   ;;  %s1863_s8 = inlined_call_operand.vmem [shape: f32[1,256], index: 8, kind: input, shape index: {}]   ;;  %s1864_s9 = inlined_call_operand.hbm [shape: f32[256,128], index: 9, kind: input, shape index: {}]   ;;  %s1865_s10 = inlined_call_operand.vmem [shape: f32[1,128], index: 10, kind: input, shape index: {}]   ;;  %s1866_s11 = inlined_call_operand.hbm [shape: f32[2,16,128], index: 11, kind: output, shape index: {}]  }
   0x1   :  { %17 = vsyncpa [#allocation6], 0 }
   0x2   :  { %18 = vsyncpa [#allocation4], 0 }
   0x3   :  { %20 = vsyncpa [#allocation4 + $0x1], 0  ;;  %s1584_s17 = smov 0   ;;  %s1586_s18 = smov 0  }
   0x4   :  { %s1588_s19 = smov 0   ;;  %s1590_s20 = smov 0  }
   0x5 LB: > { %1875 = sst [smem:[#allocation11_spill]] %s1499_s17  ;;  %s1605_s21 = sadd.s32 4294967295, %s1511_s20   ;;  %s1511_s20 = sphi %s1590_s20, %s1893_s20   ;;  %s1507_s19 = sphi %s1588_s19, %s1895_s19   ;;  %s1503_s18 = sphi %s1586_s18, %s1897_s18   ;;  %s1499_s17 = sphi %s1584_s17, %s1896_s17  }
   0x6   : > { %1876 = sst [smem:[#allocation12_spill]] %s1507_s19  ;;  %s1117_s22 = sadd.s32 4294967294, %s1511_s20  }
   0x7   : > { %s1609_s23 = sadd.s32 1, %s1511_s20   ;;  %s269_s24 = sadd.s32 1, %s1507_s19 }
   0x8   : > { %1877 = sst [smem:[#allocation13_spill]] %s1609_s23  ;;  %s266_s25 = ssub.s32 %s1511_s20, %s1609_s23 }
   0x9   : > { %p279_p0 = scmp.ne.s32.totalorder %s1507_s19, %s1503_s18  ;;  %p267_p1 = scmp.eq.s32.totalorder %s266_s25, 0 }
   0xa   : > { %p280_p2 = scmp.eq.s32.totalorder %s1605_s21, 1  ;;  %p285_p3 = scmp.ne.s32.totalorder %s1503_s18, %s1499_s17 }
   0xb   : > { %p286_p4 = scmp.eq.s32.totalorder %s1117_s22, 1  ;;  %p1118_p7 = scmp.ge.s32.totalorder %s1511_s20, 1 }
   0xc   : > { %s1620_s26 = scalar_select %p267_p1, %s1507_s19, %s269_s24  }
   0xd   : > { %p1622_p5 = por %p280_p2, %p279_p0  ;;  %p1626_p6 = por %p286_p4, %p285_p3 }
   0xe   : > { %1878 = sst [smem:[#allocation14_spill]] %s1620_s26  ;;  %p293_p8 = scmp.lt.s32.totalorder %s1511_s20, 3 }
   0xf   : > { %s1879_s27 = scalar_select %p1622_p5, 1, 0 }
  0x10   : > { %s1880_s28 = scalar_select %p1626_p6, 1, 0 }
  0x11   : > { %p1868_p9 = scmp.eq.s32.totalorder %s1605_s21, 0  ;;  %p1633_p10 = pnand %p1118_p7, %p293_p8 }
  0x12   : > { %1881 = sst [smem:[#allocation15_spill]] %s1880_s28  ;;  %s1513_s30 = smov [#allocation2]  }
  0x13   : > { %s1882_s29 = scalar_select %p1633_p10, 1, 0 }
  0x14   : > { %s323_s12 = sshll.u32 %s1513_s30, 4  ;;  %p1301_p11 = pneg %p1633_p10  ;;  %s324_s12 = int_to_ptr.vmem [resolvable:$true] %s323_s12 }
  0x15   : > { %s1514_s14 = smov [#allocation5]   ;;  %s1385_s24 = scalar_lea.hbm %s1862_s7, 4096 }
  0x16   : > { %p1641_p12 = pnand %p1868_p9, %p1301_p11  ;;  %s339_s15 = sshll.u32 %s1514_s14, 4  ;;  %s1645_s15 = int_to_ptr.vmem [resolvable:$true] %s339_s15 }
  0x17   : > { %p1386_p13 = scmp.ne.s32.totalorder %s1862_s7, %s1385_s24  ;;  %p1392_p3 = scmp.lt.u32.totalorder %s1385_s24, %s1862_s7 }
  0x18   : > { %p1387_p0 = pneg %p1641_p12 }
  0x1a   : > { %p1388_p1 = pnand %p1387_p0, %p1386_p13 }
  0x1c   : > { %p1389_p2 = pneg %p1388_p1 }
  0x1e   : > { %p1394_p4 = pnand %p1392_p3, %p1389_p2 }
  0x20   : > { %1397 = shalt.err (!%p1394_p4)
}
  0x21   : > { %s1398_s14 = scalar_lea.vmem %s324_s12, 4096  ;;  %p1406_p9 = scmp.lt.s32.totalorder %s324_s12, %s324_s12 }
  0x22   : > { %p1399_p7 = scmp.ne.s32.totalorder %s324_s12, %s1398_s14  ;;  %p1407_p6 = scmp.lt.s32.totalorder %s1398_s14, %s1398_s14 }
  0x24   : > { %p1401_p8 = pnand %p1399_p7, %p1387_p0  ;;  %p1408_p5 = por %p1407_p6, %p1406_p9 }
  0x26   : > { %p1402_p11 = pneg %p1401_p8 }
  0x28   : > { %p1409_p10 = pnand %p1408_p5, %p1402_p11 }
  0x2a   : > { %1412 = shalt.err (!%p1409_p10)
}
  0x2b   : > { %s1515_s16 = smov 256   ;;  %s1516_s22 = smov 16  }
  0x2c   : > { %1304 = dma.hbm_to_vmem [thread:$0]  (!%p1641_p12), %s1862_s7, 4096, %s324_s12, [#allocation3], %s1515_s16, %s1515_s16, %s1516_s22  }
  0x2d   : > { %s1413_s30 = scalar_lea.hbm %s1864_s9, 4096 }
  0x2e   : > { %p1414_p13 = scmp.ne.s32.totalorder %s1864_s9, %s1413_s30  ;;  %p1420_p9 = scmp.lt.u32.totalorder %s1413_s30, %s1864_s9 }
  0x30   : > { %p1416_p5 = pnand %p1414_p13, %p1387_p0 }
  0x32   : > { %p1417_p6 = pneg %p1416_p5 }
  0x34   : > { %p1422_p10 = pnand %p1420_p9, %p1417_p6 }
  0x36   : > { %1425 = shalt.err (!%p1422_p10)
}
  0x37   : > { %s1426_s12 = scalar_lea.vmem %s1645_s15, 4096  ;;  %p1434_p4 = scmp.lt.s32.totalorder %s1645_s15, %s1645_s15 }
  0x38   : > { %p1427_p1 = scmp.ne.s32.totalorder %s1645_s15, %s1426_s12  ;;  %p1435_p7 = scmp.lt.s32.totalorder %s1426_s12, %s1426_s12 }
  0x3a   : > { %p1429_p2 = pnand %p1427_p1, %p1387_p0  ;;  %p1436_p8 = por %p1435_p7, %p1434_p4 }
  0x3c   : > { %p1430_p3 = pneg %p1429_p2 }
  0x3e   : > { %p1437_p11 = pnand %p1436_p8, %p1430_p3 }
  0x40   : > { %1440 = shalt.err (!%p1437_p11)
}
  0x41   : > { %s1517_s17 = smov 128   ;;  %s1518_s23 = smov 8  }
  0x42   : > { %1307 = dma.hbm_to_vmem [thread:$0]  (!%p1641_p12), %s1864_s9, 4096, %s1645_s15, [#allocation6], %s1517_s17, %s1517_s17, %s1518_s23  }
  0x43   : > { %p1884_p13 = scmp.ne.s32.totalorder %s1882_s29, 0 }
  0x44   : > { %p1885_p0 = scmp.eq.s32.totalorder (!%p1884_p13), %s1605_s21, 0 }
  0x45   : > { %366 = sbr.rel (%p1884_p13) target bundleno = 1665 (0x681), region = 64 }
  0x4c   : > { %1486 = dma.done.wait (%p1885_p0), [#allocation3], 4096   ;;  %p1886_p5 = pmov %p1885_p0 }
  0x4d   : > { %p1887_p6 = pmov %p1885_p0 }
  0x4e   : > { %1488 = vsyncadd (%p1886_p5), [#allocation3], 4294963200 }
  0x4f   : > { %1490 = dma.done.wait (%p1887_p6), [#allocation6], 4096   ;;  %p1888_p9 = pmov %p1885_p0 }
  0x50   : > { %p410_p10 = scmp.lt.s32.totalorder %s1605_s21, 1  ;;  %v458_v10 = vld [vmem:[%s1858_s3] sm:$0xff]  ;;  %vm486_vm0 = vcmask 130048   ;;  %v463_v11 = vld [vmem:[%s1859_s4 + $0x8] sm:$0xff]  ;;  %v1519_v12 = vmov 0   ;;  %v464_v14 = vld [vmem:[%s1859_s4 + $0x10] sm:$0xff] }
  0x51   : > { %1492 = vsyncadd (%p1888_p9), [#allocation6], 4294963200  ;;  %1198 = vmatprep.mubr.msk.f32.mxu0 %vm486_vm0, %v458_v10  ;;  %1360 = vset.pattern.permute.xlu1 %v1519_v12  ;;  %v462_v13 = vld [vmem:[%s1859_s4] sm:$0xff]  ;;  %v465_v15 = vld [vmem:[%s1859_s4 + $0x18] sm:$0xff]  ;;  %vm634_vm1 = vcmask 261120   ;;  %s407_s26 = sand.u32 1, %s1503_s18  }
  0x52   : > { %s411_s13 = scalar_select %p410_p10, %s1605_s21, 1  ;;  %1359 = vset.pattern.permute.xlu0 %v1519_v12  ;;  %v622_v16 = vld [vmem:[%s1861_s6] sm:$0xff]  ;;  %v623_v17 = vld [vmem:[%s1861_s6 + $0x8] sm:$0xff]  ;;  %v460_v36 = vld [vmem:[%s1858_s3 + $0x10] sm:$0xff] }
  0x53   : > { %v1742_v26 = vld [vmem:[%s1856_s1] ss:$0 sm:$0xff]  ;;  %v459_v35 = vld [vmem:[%s1858_s3 + $0x8] sm:$0xff]  ;;  %v461_v37 = vld [vmem:[%s1858_s3 + $0x18] sm:$0xff]  ;;  %s1125_s30 = sshll.u32 %s407_s26, 4  ;;  %s1143_s17 = sshll.u32 %s1605_s21, 8 }
  0x54   : > { %s1142_s15 = sshll.u32 %s411_s13, 4  ;;  %v1748_v30 = vld [vmem:[%s1857_s2] ss:$0 sm:$0xff]  ;;  %s409_s14 = scalar_lea.vmem [#allocation7], %s1125_s30 }
  0x55   : > { %s414_s19 = scalar_lea.vmem %s1855_s0, %s1142_s15  ;;  %v584_v38 = vld [vmem:[%s1860_s5] sm:$0xff]  ;;  %s1033_s12 = sshll.u32 %s409_s14, 4  ;;  %s1806_s12 = int_to_ptr.vmem [resolvable:$true] %s1033_s12 }
  0x56   : > { %v1709_v0 = vld [vmem:[%s414_s19] sm:$0xff]  ;;  %v1712_v1 = vld [vmem:[%s414_s19 + $0x8] sm:$0xff]  ;;  %1212 = vmatprep.mubr.msk.f32.mxu1 %vm634_vm1, %v584_v38  ;;  %s1811_s16 = scalar_lea.hbm %s1866_s11, %s1143_s17  ;;  %s1814_s13 = scalar_lea.sflag [#allocation4], %s407_s26 }
  0x57   : > { %419 = vadd.xlane.f32.xlu0 %v1709_v0  ;;  %v745_v38 = vld [vmem:[#allocation2 + $0x8] sm:$0xff]  ;;  %s1441_s15 = scalar_lea.vmem %s1806_s12, 256  ;;  %p1889_p1 = scmp.ne.s32.totalorder %s1879_s27, 0 }
  0x58   : > { %p1442_p12 = scmp.ne.s32.totalorder %s1806_s12, %s1441_s15  ;;  %s1521_s21 = smov [#allocation7]  }
  0x59   : > { %s1445_s22 = sshll.u32 %s1521_s21, 4  ;;  %s1446_s22 = int_to_ptr.vmem [resolvable:$false] %s1445_s22 }
  0x5a   : > { %p1443_p2 = pnand %p1442_p12, %p1889_p1  ;;  %s1447_s29 = scalar_lea.vmem %s1446_s22, 512 }
  0x5b   : > { %421 = vadd.xlane.f32.xlu0 %v1712_v1  ;;  %p1448_p4 = scmp.lt.s32.totalorder %s1806_s12, %s1446_s22  ;;  %p1449_p7 = scmp.lt.s32.totalorder %s1447_s29, %s1441_s15 }
  0x5c   : > { %p1444_p3 = pneg %p1443_p2 }
  0x5d   : > { %p1450_p8 = por %p1449_p7, %p1448_p4 }
  0x5f   : > { %p1451_p11 = pnand %p1450_p8, %p1444_p3 }
  0x71   : > { %468 = vperm.xlu0 %1359, %v462_v13  }
  0xe4   : > { %v420_v2 = vpop.xlane.xlu0 %419 }
  0xe5   : > { %v424_v3 = vmul.f32 0.0078125, %v420_v2 }
  0xe7   : > { %v426_v4 = vsub.f32 %v1709_v0, %v424_v3 }
  0xe8   : > { %v422_v5 = vpop.xlane.xlu0 %421 }
  0xe9   : > { %v425_v6 = vmul.f32 0.0078125, %v422_v5  ;;  %v428_v7 = vmul.f32 %v426_v4, %v426_v4 }
  0xeb   : > { %v427_v8 = vsub.f32 %v1712_v1, %v425_v6  ;;  %430 = vadd.xlane.f32.xlu1 %v428_v7 }
  0xed   : > { %v429_v9 = vmul.f32 %v427_v8, %v427_v8 }
  0xef   : > { %432 = vadd.xlane.f32.xlu1 %v429_v9 }
  0xf0   : > { %v469_v41 = vpop.permute.xlu0 %468 }
 0x100   : > { %473 = vperm.xlu1 %1360, %v463_v11  }
 0x104   : > { %478 = vperm.xlu1 %1360, %v464_v14  }
 0x108   : > { %483 = vperm.xlu1 %1360, %v465_v15  }
 0x10c   : > { %626 = vperm.xlu1 %1360, %v622_v16  }
 0x110   : > { %631 = vperm.xlu1 %1360, %v623_v17  }
 0x178   : > { %v431_v18 = vpop.xlane.xlu1 %430 }
 0x179   : > { %v434_v19 = vmul.f32 0.0078125, %v431_v18 }
 0x17b   : > { %v436_v20 = vadd.f32 1e-05, %v434_v19 }
 0x17c   : > { %v433_v21 = vpop.xlane.xlu1 %432 }
 0x17d   : > { %1361 = vrsqrt.f32 %v436_v20  ;;  %v435_v22 = vmul.f32 0.0078125, %v433_v21 }
 0x17f   : > { %v437_v23 = vadd.f32 1e-05, %v435_v22 }
 0x180   : > { %v474_v39 = vpop.permute.xlu1 %473 }
 0x181   : > { %1363 = vrsqrt.f32 %v437_v23 }
 0x184   : > { %v479_v40 = vpop.permute.xlu1 %478 }
 0x187   : > { %v1362_v24 = vpop.eup %1361 }
 0x188   : > { %v440_v25 = vmul.f32 %v1362_v24, %v426_v4  ;;  %v484_v47 = vpop.permute.xlu1 %483 }
 0x18a   : > { %v448_v29 = vmul.f32 %v1742_v26, %v440_v25 }
 0x18b   : > { %v1364_v27 = vpop.eup %1363 }
 0x18c   : > { %v441_v28 = vmul.f32 %v1364_v27, %v427_v8  ;;  %v456_v32 = vadd.f32 %v1748_v30, %v448_v29  ;;  %v627_v29 = vpop.permute.xlu1 %626 }
 0x18e   : > { %v449_v31 = vmul.f32 %v1742_v26, %v441_v28  ;;  %v585_v28 = vld [vmem:[%s1860_s5 + $0x8] sm:$0xff] }
 0x190   : > { %v457_v33 = vadd.f32 %v1748_v30, %v449_v31  ;;  %v632_v31 = vpop.permute.xlu1 %631 }
 0x192   : > { %v1215_v34 = vpack.c.bf16 %v457_v33, %v456_v32 }
 0x194   : > { %1216 = vmatprep.subr.bf16.mxu0 %v1215_v34 }
 0x195   : > { %1218 = vmatpush3.bf16.msra.mxu0 %v1215_v34 }
 0x198   : > { %1199 = vmatmul.mubr.msk.f32.vlgmr.msra.gmra.mrb[0].mxu0 %vm486_vm0, %v459_v35 }
 0x199   : > { %1201 = vmatprep.mubr.msk.f32.mxu0 %vm486_vm0, %v460_v36 }
 0x19c   : > { %1202 = vmatmul.mubr.msk.f32.gmra.mrb[2].mxu0 %vm486_vm0, %v461_v37 }
 0x26b   : > { %v1200_v42 = vpop.f32.mrb[0].mxu0 }
 0x26c   : > { %v571_v43 = vadd.f32 %v1200_v42, %v474_v39  ;;  %v565_v44 = vpop.f32.mrb[1].mxu0  ;;  %v747_v39 = vld [vmem:[#allocation2 + $0x18] sm:$0xff]  ;;  %v746_v42 = vld [vmem:[#allocation2 + $0x10] sm:$0xff] }
 0x26d   : > { %v566_v45 = vadd.f32 %v565_v44, %v469_v41  ;;  %v1227_v41 = vpack.c.bf16 %v747_v39, %v745_v38  ;;  %v751_v44 = vld [vmem:[#allocation2 + $0x38] sm:$0xff]  ;;  %v902_v39 = vld [vmem:[#allocation5 + $0x8] sm:$0xff] }
 0x26e   : > { %v591_v46 = vmul.f32 0.044715, %v571_v43  ;;  %v587_v11 = vmul.f32 0.5, %v571_v43 }
 0x26f   : > { %v590_v48 = vmul.f32 0.044715, %v566_v45  ;;  %v1203_v49 = vpop.f32.mrb[2].mxu0  ;;  %v586_v13 = vmul.f32 0.5, %v566_v45  ;;  %1228 = vmatprep.subr.bf16.mxu0 %v1227_v41 }
 0x270   : > { %v595_v50 = vmul.f32 %v591_v46, %v571_v43  ;;  %v581_v51 = vadd.f32 %v1203_v49, %v484_v47  ;;  %v575_v52 = vpop.f32.mrb[3].mxu0  ;;  %v748_v47 = vld [vmem:[#allocation2 + $0x20] sm:$0xff]  ;;  %v755_v49 = vld [vmem:[#allocation2 + $0x58] sm:$0xff] }
 0x271   : > { %v594_v53 = vmul.f32 %v590_v48, %v566_v45  ;;  %v576_v54 = vadd.f32 %v575_v52, %v479_v40  ;;  %v744_v40 = vld [vmem:[#allocation2] sm:$0xff]  ;;  %v750_v48 = vld [vmem:[#allocation2 + $0x30] sm:$0xff] }
 0x272   : > { %v593_v55 = vmul.f32 0.044715, %v581_v51  ;;  %v599_v56 = vmul.f32 %v595_v50, %v571_v43  ;;  %v589_v19 = vmul.f32 0.5, %v581_v51  ;;  %v754_v52 = vld [vmem:[#allocation2 + $0x50] sm:$0xff] }
 0x273   : > { %v592_v57 = vmul.f32 0.044715, %v576_v54  ;;  %v598_v58 = vmul.f32 %v594_v53, %v566_v45  ;;  %v588_v22 = vmul.f32 0.5, %v576_v54 }
 0x274   : > { %v597_v59 = vmul.f32 %v593_v55, %v581_v51  ;;  %v603_v60 = vadd.f32 %v599_v56, %v571_v43  ;;  %v749_v43 = vld [vmem:[#allocation2 + $0x28] sm:$0xff] }
 0x275   : > { %v596_v61 = vmul.f32 %v592_v57, %v576_v54  ;;  %v602_v62 = vadd.f32 %v598_v58, %v566_v45  ;;  %v1229_v45 = vpack.c.bf16 %v746_v42, %v744_v40  ;;  %v1231_v46 = vpack.c.bf16 %v751_v44, %v749_v43 }
 0x276   : > { %v601_v63 = vmul.f32 %v597_v59, %v581_v51  ;;  %v607_v2 = vmul.f32 0.7978846, %v603_v60 }
 0x277   : > { %v600_v3 = vmul.f32 %v596_v61, %v576_v54  ;;  %v606_v4 = vmul.f32 0.7978846, %v602_v62  ;;  %1230 = vmatpush1.bf16.msra.mxu0 %v1229_v45  ;;  %v757_v62 = vld [vmem:[#allocation2 + $0x68] sm:$0xff] }
 0x278   : > { %1365 = vtanh.f32 %v607_v2  ;;  %v605_v5 = vadd.f32 %v601_v63, %v581_v51  ;;  %1232 = vmatprep.subr.bf16.mxu0 %v1231_v46  ;;  %v752_v51 = vld [vmem:[#allocation2 + $0x40] sm:$0xff]  ;;  %v759_v63 = vld [vmem:[#allocation2 + $0x78] sm:$0xff] }
 0x279   : > { %1367 = vtanh.f32 %v606_v4  ;;  %v604_v6 = vadd.f32 %v600_v3, %v576_v54  ;;  %v1237_v53 = vpack.c.bf16 %v754_v52, %v752_v51  ;;  %v1239_v2 = vpack.c.bf16 %v759_v63, %v757_v62  ;;  %v756_v3 = vld [vmem:[#allocation2 + $0x60] sm:$0xff]  ;;  %v758_v4 = vld [vmem:[#allocation2 + $0x70] sm:$0xff] }
 0x27a   : > { %v609_v7 = vmul.f32 0.7978846, %v605_v5  ;;  %v1241_v5 = vpack.c.bf16 %v758_v4, %v756_v3  ;;  %v905_v63 = vld [vmem:[#allocation5 + $0x20] sm:$0xff]  ;;  %v924_v3 = vld [vmem:[#allocation5 + $0xb8] sm:$0xff]  ;;  %v907_v4 = vld [vmem:[#allocation5 + $0x30] sm:$0xff] }
 0x27b   : > { %v608_v8 = vmul.f32 0.7978846, %v604_v6  ;;  %v761_v6 = vld [vmem:[#allocation2 + $0x88] sm:$0xff] }
 0x27c   : > { %1369 = vtanh.f32 %v609_v7  ;;  %v763_v7 = vld [vmem:[#allocation2 + $0x98] sm:$0xff] }
 0x27d   : > { %1371 = vtanh.f32 %v608_v8  ;;  %v1243_v8 = vpack.c.bf16 %v763_v7, %v761_v6  ;;  %v925_v7 = vld [vmem:[#allocation5 + $0xc0] sm:$0xff] }
 0x282   : > { %v1366_v9 = vpop.eup %1365 }
 0x283   : > { %v1368_v10 = vpop.eup %1367  ;;  %v615_v12 = vadd.f32 1.0, %v1366_v9  ;;  %v760_v9 = vld [vmem:[#allocation2 + $0x80] sm:$0xff] }
 0x284   : > { %v614_v14 = vadd.f32 1.0, %v1368_v10  ;;  %v762_v10 = vld [vmem:[#allocation2 + $0x90] sm:$0xff] }
 0x285   : > { %v619_v15 = vmul.f32 %v615_v12, %v587_v11  ;;  %v1245_v11 = vpack.c.bf16 %v762_v10, %v760_v9  ;;  %v765_v12 = vld [vmem:[#allocation2 + $0xa8] sm:$0xff]  ;;  %v909_v9 = vld [vmem:[#allocation5 + $0x40] sm:$0xff] }
 0x286   : > { %v1370_v16 = vpop.eup %1369  ;;  %v618_v17 = vmul.f32 %v614_v14, %v586_v13  ;;  %v767_v13 = vld [vmem:[#allocation2 + $0xb8] sm:$0xff] }
 0x287   : > { %v1372_v18 = vpop.eup %1371  ;;  %v617_v20 = vadd.f32 1.0, %v1370_v16  ;;  %v1247_v14 = vpack.c.bf16 %v767_v13, %v765_v12  ;;  %v766_v16 = vld [vmem:[#allocation2 + $0xb0] sm:$0xff]  ;;  %v928_v13 = vld [vmem:[#allocation5 + $0xd8] sm:$0xff] }
 0x288   : > { %v1219_v21 = vpack.c.bf16 %v619_v15, %v618_v17  ;;  %v616_v23 = vadd.f32 1.0, %v1372_v18  ;;  %v764_v15 = vld [vmem:[#allocation2 + $0xa0] sm:$0xff]  ;;  %v769_v18 = vld [vmem:[#allocation2 + $0xc8] sm:$0xff]  ;;  %v927_v12 = vld [vmem:[#allocation5 + $0xd0] sm:$0xff] }
 0x289   : > { %v621_v24 = vmul.f32 %v617_v20, %v589_v19  ;;  %v1249_v17 = vpack.c.bf16 %v766_v16, %v764_v15  ;;  %v771_v19 = vld [vmem:[#allocation2 + $0xd8] sm:$0xff]  ;;  %v1279_v15 = vpack.c.bf16 %v928_v13, %v927_v12  ;;  %v911_v16 = vld [vmem:[#allocation5 + $0x50] sm:$0xff] }
 0x28a   : > { %1220 = vmatprep.subr.bf16.mxu1 %v1219_v21  ;;  %v620_v25 = vmul.f32 %v616_v23, %v588_v22  ;;  %v1251_v20 = vpack.c.bf16 %v771_v19, %v769_v18  ;;  %v770_v22 = vld [vmem:[#allocation2 + $0xd0] sm:$0xff]  ;;  %v929_v18 = vld [vmem:[#allocation5 + $0xe0] sm:$0xff]  ;;  %v930_v19 = vld [vmem:[#allocation5 + $0xe8] sm:$0xff] }
 0x28b   : > { %1222 = vmatpush3.bf16.msra.mxu1 %v1219_v21  ;;  %v768_v21 = vld [vmem:[#allocation2 + $0xc0] sm:$0xff] }
 0x28c   : > { %v1223_v27 = vpack.c.bf16 %v621_v24, %v620_v25  ;;  %v1253_v23 = vpack.c.bf16 %v770_v22, %v768_v21  ;;  %v773_v24 = vld [vmem:[#allocation2 + $0xe8] sm:$0xff]  ;;  %v775_v25 = vld [vmem:[#allocation2 + $0xf8] sm:$0xff]  ;;  %v1283_v21 = vpack.c.bf16 %v930_v19, %v929_v18  ;;  %v913_v22 = vld [vmem:[#allocation5 + $0x60] sm:$0xff] }
 0x28e   : > { %1224 = vmatprep.subr.bf16.mxu1 %v1223_v27 }
 0x28f   : > { %1226 = vmatpush3.bf16.msra.mxu1 %v1223_v27  ;;  %v1255_v27 = vpack.c.bf16 %v775_v25, %v773_v24  ;;  %v931_v24 = vld [vmem:[#allocation5 + $0xf0] sm:$0xff]  ;;  %v932_v25 = vld [vmem:[#allocation5 + $0xf8] sm:$0xff] }
 0x292   : > { %1213 = vmatmul.mubr.msk.f32.vlgmr.msra.gmra.mrb[0].mxu1 %vm634_vm1, %v585_v28  ;;  %v772_v28 = vld [vmem:[#allocation2 + $0xe0] sm:$0xff] }
 0x365   : > { %v1214_v32 = vpop.f32.mrb[0].mxu1 }
 0x366   : > { %v713_v33 = vadd.f32 %v1214_v32, %v632_v31  ;;  %v707_v34 = vpop.f32.mrb[1].mxu1  ;;  %v1520_v32 = vmov 0.0  }
 0x367   : > { %v708_v35 = vadd.f32 %v707_v34, %v627_v29  ;;  %v774_v29 = vld [vmem:[#allocation2 + $0xf0] sm:$0xff]  ;;  %852 = vmatprep.mubr.f32.mxu0 %v1520_v32  ;;  %v918_v34 = vld [vmem:[#allocation5 + $0x88] sm:$0xff] }
 0x368   : > { %v1774_v36 = vadd.f32 %v713_v33, %v1712_v1  ;;  %v753_v1 = vld [vmem:[#allocation2 + $0x48] sm:$0xff]  ;;  %v1257_v31 = vpack.c.bf16 %v774_v29, %v772_v28  ;;  %v917_v33 = vld [vmem:[#allocation5 + $0x80] sm:$0xff]  ;;  %v1287_v28 = vpack.c.bf16 %v932_v25, %v931_v24  ;;  %v915_v29 = vld [vmem:[#allocation5 + $0x70] sm:$0xff] }
 0x369   : > { %v1777_v37 = vadd.f32 %v708_v35, %v1709_v0  ;;  %v1233_v0 = vpack.c.bf16 %v750_v48, %v748_v47  ;;  %v1235_v50 = vpack.c.bf16 %v755_v49, %v753_v1  ;;  %v901_v35 = vld [vmem:[#allocation5] sm:$0xff]  ;;  %v1259_v38 = vpack.c.bf16 %v918_v34, %v917_v33 }
 0x36a   : > { %720 = vadd.xlane.f32.xlu0 %v1774_v36  ;;  %v1261_v40 = vpack.c.bf16 %v902_v39, %v901_v35  ;;  %v778_v33 = vlaneseq }
 0x36b   : > { %718 = vadd.xlane.f32.xlu1 %v1777_v37  ;;  %1234 = vmatpush1.bf16.msra.mxu0 %v1233_v0 }
 0x36c   : > { %1236 = vmatprep.subr.bf16.mxu0 %v1235_v50  ;;  %1260 = vmatprep.subr.bf16.mxu1 %v1259_v38  ;;  %v779_v34 = vshrl.u32 %v778_v33, 7  ;;  %v776_v38 = vld [vmem:[%s1863_s8] sm:$0x3] }
 0x36d   : > { %1262 = vmatpush3.bf16.msra.mxu1 %v1261_v40 }
 0x36e   : > { %v780_v35 = vsub.s32 0, %v779_v34  ;;  %v784_v39 = vsub.s32 1, %v779_v34 }
 0x36f   : > { %1238 = vmatpush1.bf16.msra.mxu0 %v1237_v53  ;;  %v919_v53 = vld [vmem:[#allocation5 + $0x90] sm:$0xff] }
 0x370   : > { %1240 = vmatprep.subr.bf16.mxu0 %v1239_v2  ;;  %v781_v40 = vrot.slane %v776_v38, %v780_v35 }
 0x373   : > { %1242 = vmatpush1.bf16.msra.mxu0 %v1241_v5  ;;  %v908_v5 = vld [vmem:[#allocation5 + $0x38] sm:$0xff] }
 0x374   : > { %1244 = vmatprep.subr.bf16.mxu0 %v1243_v8  ;;  %v1273_v6 = vpack.c.bf16 %v908_v5, %v907_v4  ;;  %v926_v8 = vld [vmem:[#allocation5 + $0xc8] sm:$0xff] }
 0x375   : > { %v1275_v10 = vpack.c.bf16 %v926_v8, %v925_v7 }
 0x377   : > { %1246 = vmatpush1.bf16.msra.mxu0 %v1245_v11  ;;  %v910_v11 = vld [vmem:[#allocation5 + $0x48] sm:$0xff] }
 0x378   : > { %1248 = vmatprep.subr.bf16.mxu0 %v1247_v14  ;;  %v1277_v14 = vpack.c.bf16 %v910_v11, %v909_v9 }
 0x37b   : > { %1250 = vmatpush1.bf16.msra.mxu0 %v1249_v17  ;;  %v912_v17 = vld [vmem:[#allocation5 + $0x58] sm:$0xff] }
 0x37c   : > { %1252 = vmatprep.subr.bf16.mxu0 %v1251_v20  ;;  %v1281_v20 = vpack.c.bf16 %v912_v17, %v911_v16 }
 0x37f   : > { %1254 = vmatpush1.bf16.msra.mxu0 %v1253_v23  ;;  %v914_v23 = vld [vmem:[#allocation5 + $0x68] sm:$0xff] }
 0x380   : > { %1256 = vmatprep.subr.bf16.mxu0 %v1255_v27  ;;  %v1285_v27 = vpack.c.bf16 %v914_v23, %v913_v22 }
 0x383   : > { %1258 = vmatpush1.bf16.msra.mxu0 %v1257_v31  ;;  %v916_v31 = vld [vmem:[#allocation5 + $0x78] sm:$0xff] }
 0x3f7   : > { %v721_v54 = vpop.xlane.xlu0 %720 }
 0x3f8   : > { %v719_v55 = vpop.xlane.xlu1 %718  ;;  %v723_v56 = vmul.f32 0.0078125, %v721_v54  ;;  %v920_v54 = vld [vmem:[#allocation5 + $0x98] sm:$0xff] }
 0x3f9   : > { %v722_v57 = vmul.f32 0.0078125, %v719_v55  ;;  %v1263_v55 = vpack.c.bf16 %v920_v54, %v919_v53 }
 0x3fa   : > { %v1785_v59 = vsub.f32 %v1774_v36, %v723_v56  ;;  %v903_v56 = vld [vmem:[#allocation5 + $0x10] sm:$0xff] }
 0x3fb   : > { %v1782_v58 = vsub.f32 %v1777_v37, %v722_v57  ;;  %v904_v57 = vld [vmem:[#allocation5 + $0x18] sm:$0xff]  ;;  %1264 = vmatprep.subr.bf16.mxu1 %v1263_v55 }
 0x3fc   : > { %v727_v61 = vmul.f32 %v1785_v59, %v1785_v59 }
 0x3fd   : > { %v726_v60 = vmul.f32 %v1782_v58, %v1782_v58 }
 0x3ff   : > { %728 = vadd.xlane.f32.xlu1 %v726_v60  ;;  %v921_v60 = vld [vmem:[#allocation5 + $0xa0] sm:$0xff] }
 0x403   : > { %730 = vadd.xlane.f32.xlu1 %v727_v61  ;;  %v922_v61 = vld [vmem:[#allocation5 + $0xa8] sm:$0xff] }
 0x404   : > { %v1267_v62 = vpack.c.bf16 %v922_v61, %v921_v60 }
 0x48c   : > { %v729_v41 = vpop.xlane.xlu1 %728 }
 0x48d   : > { %v732_v42 = vmul.f32 0.0078125, %v729_v41  ;;  %v785_v41 = vrot.slane %v776_v38, %v784_v39 }
 0x48f   : > { %v734_v43 = vadd.f32 1e-05, %v732_v42 }
 0x490   : > { %v731_v44 = vpop.xlane.xlu1 %730 }
 0x491   : > { %1373 = vrsqrt.f32 %v734_v43  ;;  %v733_v45 = vmul.f32 0.0078125, %v731_v44 }
 0x493   : > { %v735_v46 = vadd.f32 1e-05, %v733_v45 }
 0x495   : > { %1375 = vrsqrt.f32 %v735_v46 }
 0x49b   : > { %v1374_v47 = vpop.eup %1373 }
 0x49c   : > { %v738_v48 = vmul.f32 %v1374_v47, %v1782_v58  ;;  %v1265_v58 = vpack.c.bf16 %v904_v57, %v903_v56 }
 0x49e   : > { %v740_v1 = vmul.f32 %v1742_v26, %v738_v48  ;;  %1266 = vmatpush3.bf16.msra.mxu1 %v1265_v58 }
 0x49f   : > { %v1376_v49 = vpop.eup %1375  ;;  %1268 = vmatprep.subr.bf16.mxu1 %v1267_v62 }
 0x4a0   : > { %v742_v0 = vadd.f32 %v1748_v30, %v740_v1  ;;  %v739_v50 = vmul.f32 %v1376_v49, %v1785_v59  ;;  %v906_v59 = vld [vmem:[#allocation5 + $0x28] sm:$0xff] }
 0x4a1   : > { %v1269_v2 = vpack.c.bf16 %v906_v59, %v905_v63 }
 0x4a2   : > { %853 = vmatmul.mubr.f32.vlgmr.msra.gmra.mrb[4].mxu0 %v742_v0  ;;  %v741_v51 = vmul.f32 %v1742_v26, %v739_v50  ;;  %v923_v26 = vld [vmem:[#allocation5 + $0xb0] sm:$0xff] }
 0x4a3   : > { %858 = vmatprep.mubr.f32.mxu0 %v1520_v32  ;;  %1270 = vmatpush3.bf16.msra.mxu1 %v1269_v2  ;;  %v1289_v32 = vpack.c.bf16 %v916_v31, %v915_v29 }
 0x4a4   : > { %v743_v52 = vadd.f32 %v1748_v30, %v741_v51  ;;  %v1271_v30 = vpack.c.bf16 %v924_v3, %v923_v26 }
 0x4a6   : > { %859 = vmatmul.mubr.f32.gmra.mrb[6].mxu0 %v743_v52  ;;  %1272 = vmatprep.subr.bf16.mxu1 %v1271_v30 }
 0x4a7   : > { %1274 = vmatpush3.bf16.msra.mxu1 %v1273_v6 }
 0x4a8   : > { %1276 = vmatprep.subr.bf16.mxu1 %v1275_v10 }
 0x4ab   : > { %1278 = vmatpush3.bf16.msra.mxu1 %v1277_v14 }
 0x4ac   : > { %1280 = vmatprep.subr.bf16.mxu1 %v1279_v15 }
 0x4af   : > { %1282 = vmatpush3.bf16.msra.mxu1 %v1281_v20 }
 0x4b0   : > { %1284 = vmatprep.subr.bf16.mxu1 %v1283_v21  ;;  %v1136_v21 = vld [vmem:[%s1865_s10] ss:$0 sm:$0xff] }
 0x4b3   : > { %1286 = vmatpush3.bf16.msra.mxu1 %v1285_v27 }
 0x4b4   : > { %1288 = vmatprep.subr.bf16.mxu1 %v1287_v28 }
 0x4b7   : > { %1290 = vmatpush3.bf16.msra.mxu1 %v1289_v32 }
 0x575   : > { %v854_v42 = vpop.f32.mrb[4].mxu0 }
 0x576   : > { %v855_v43 = vadd.f32 %v854_v42, %v781_v40  ;;  %v856_v44 = vpop.f32.mrb[5].mxu0 }
 0x577   : > { %v857_v45 = vadd.f32 %v856_v44, %v785_v41 }
 0x578   : > { %v869_v46 = vmul.f32 0.044715, %v855_v43  ;;  %v865_v9 = vmul.f32 0.5, %v855_v43 }
 0x579   : > { %v870_v47 = vmul.f32 0.044715, %v857_v45  ;;  %v860_v48 = vpop.f32.mrb[6].mxu0  ;;  %v866_v7 = vmul.f32 0.5, %v857_v45 }
 0x57a   : > { %v873_v1 = vmul.f32 %v869_v46, %v855_v43  ;;  %v861_v49 = vadd.f32 %v860_v48, %v781_v40  ;;  %v862_v0 = vpop.f32.mrb[7].mxu0 }
 0x57b   : > { %v874_v50 = vmul.f32 %v870_v47, %v857_v45  ;;  %v863_v51 = vadd.f32 %v862_v0, %v785_v41 }
 0x57c   : > { %v877_v52 = vmul.f32 %v873_v1, %v855_v43  ;;  %v871_v53 = vmul.f32 0.044715, %v861_v49  ;;  %v867_v17 = vmul.f32 0.5, %v861_v49 }
 0x57d   : > { %v872_v54 = vmul.f32 0.044715, %v863_v51  ;;  %v878_v55 = vmul.f32 %v874_v50, %v857_v45  ;;  %v868_v15 = vmul.f32 0.5, %v863_v51 }
 0x57e   : > { %v881_v56 = vadd.f32 %v877_v52, %v855_v43  ;;  %v875_v57 = vmul.f32 %v871_v53, %v861_v49 }
 0x57f   : > { %v876_v58 = vmul.f32 %v872_v54, %v863_v51  ;;  %v882_v60 = vadd.f32 %v878_v55, %v857_v45 }
 0x580   : > { %v885_v61 = vmul.f32 0.7978846, %v881_v56  ;;  %v879_v62 = vmul.f32 %v875_v57, %v861_v49 }
 0x581   : > { %v886_v63 = vmul.f32 0.7978846, %v882_v60  ;;  %v880_v59 = vmul.f32 %v876_v58, %v863_v51 }
 0x582   : > { %1377 = vtanh.f32 %v885_v61  ;;  %v883_v2 = vadd.f32 %v879_v62, %v861_v49 }
 0x583   : > { %1379 = vtanh.f32 %v886_v63  ;;  %v884_v26 = vadd.f32 %v880_v59, %v863_v51 }
 0x584   : > { %v887_v3 = vmul.f32 0.7978846, %v883_v2 }
 0x585   : > { %v888_v30 = vmul.f32 0.7978846, %v884_v26 }
 0x586   : > { %1381 = vtanh.f32 %v887_v3 }
 0x587   : > { %1383 = vtanh.f32 %v888_v30 }
 0x58c   : > { %v1378_v4 = vpop.eup %1377 }
 0x58d   : > { %v1380_v5 = vpop.eup %1379  ;;  %v893_v6 = vadd.f32 1.0, %v1378_v4 }
 0x58e   : > { %v894_v8 = vadd.f32 1.0, %v1380_v5 }
 0x58f   : > { %v897_v13 = vmul.f32 %v893_v6, %v865_v9 }
 0x590   : > { %v1382_v10 = vpop.eup %1381  ;;  %v898_v11 = vmul.f32 %v894_v8, %v866_v7 }
 0x591   : > { %v1384_v12 = vpop.eup %1383  ;;  %v895_v14 = vadd.f32 1.0, %v1382_v10 }
 0x592   : > { %1004 = vmatprep.mubr.f32.mxu1 %v898_v11  ;;  %v896_v16 = vadd.f32 1.0, %v1384_v12 }
 0x593   : > { %1005 = vmatmul.mubr.f32.vlgmr.msra.gmra.mrb[2].mxu1 %v897_v13  ;;  %v899_v19 = vmul.f32 %v895_v14, %v867_v17 }
 0x594   : > { %v900_v18 = vmul.f32 %v896_v16, %v868_v15 }
 0x596   : > { %1009 = vmatprep.mubr.f32.mxu1 %v900_v18 }
 0x597   : > { %1010 = vmatmul.mubr.f32.gmra.mrb[4].mxu1 %v899_v19 }
 0x666   : > { %v1188_v20 = vpop.f32.mrb[2].mxu1 }
 0x667   : > { %v1189_v22 = vpop.f32.mrb[3].mxu1 }
 0x668   : > { %v1190_v23 = vadd.f32 %v1189_v22, %v1188_v20 }
 0x66a   : > { %v1007_v24 = vadd.f32 %v1190_v23, %v1136_v21  ;;  %v1191_v25 = vpop.f32.mrb[4].mxu1 }
 0x66b   : > { %v1192_v27 = vpop.f32.mrb[5].mxu1 }
 0x66c   : > { %v1015_v28 = vadd.f32 %v1007_v24, %v1777_v37  ;;  %v1193_v29 = vadd.f32 %v1192_v27, %v1191_v25 }
 0x66e   : > { %1017 = vst [vmem:[%s409_s14] sm:$0xff] %v1015_v28  ;;  %v1012_v31 = vadd.f32 %v1193_v29, %v1136_v21 }
 0x670   : > { %v1016_v32 = vadd.f32 %v1012_v31, %v1774_v36 }
 0x672   : > { %1018 = vst [vmem:[%s409_s14 + $0x8] sm:$0xff] %v1016_v32 }
 0x673   : > { %1454 = shalt.err (!%p1451_p11)
}
 0x674   : > { %s1455_s19 = scalar_lea.hbm %s1811_s16, 256  ;;  %s1459_s25 = scalar_lea.hbm %s1866_s11, 512 }
 0x675   : > { %p1456_p13 = scmp.ne.s32.totalorder %s1811_s16, %s1455_s19  ;;  %p1460_p6 = scmp.lt.u32.totalorder %s1811_s16, %s1866_s11 }
 0x676   : > { %p1461_p9 = scmp.lt.u32.totalorder %s1459_s25, %s1455_s19  ;;  %p1463_p12 = scmp.lt.u32.totalorder %s1455_s19, %s1811_s16 }
 0x677   : > { %p1457_p0 = pnand %p1456_p13, %p1889_p1 }
 0x678   : > { %p1462_p10 = por %p1461_p9, %p1460_p6 }
 0x679   : > { %p1458_p5 = pneg %p1457_p0 }
 0x67a   : > { %p1464_p2 = por %p1463_p12, %p1462_p10 }
 0x67c   : > { %p1465_p3 = pnand %p1464_p2, %p1458_p5 }
 0x67e   : > { %1468 = shalt.err (!%p1465_p3)
}
 0x67f   : > { %s1522_s17 = smov 128   ;;  %s1523_s23 = smov 8  }
 0x680   : > { %1299 = dma.vmem_to_hbm [thread:$0]  (%p1889_p1), %s1806_s12, 256, %s1811_s16, %s1814_s13, %s1522_s17, %s1522_s17, %s1523_s23  }
 0x681 PF: > { %s1890_s28 = sld [smem:[#allocation11_spill]]  ;;  %s1891_s15 = sld [smem:[#allocation15_spill]] }
 0x682   : > { %p1316_p4 = scmp.ge.s32.totalorder %s1511_s20, 2 }
 0x687   : > { %s1048_s21 = sand.u32 1, %s1890_s28   ;;  %p1892_p7 = scmp.ne.s32.totalorder %s1891_s15, 0 }
 0x688   : > { %s1049_s22 = scalar_lea.sflag [#allocation4], %s1048_s21 }
 0x689   : > { %p1309_p8 = pnand %p1316_p4, %p1892_p7 }
 0x68b   : > { %1494 = dma.done.wait (!%p1309_p8), %s1049_s22, 256  }
 0x68c   : > { %1496 = vsyncadd (!%p1309_p8), %s1049_s22, 4294967040  ;;  %s1893_s20 = sld [smem:[#allocation13_spill]]  ;;  %s1894_s29 = sld [smem:[#allocation12_spill]] }
 0x68d   : > { %s1895_s19 = sld [smem:[#allocation14_spill]]  ;;  %s1896_s17 = smov %s1503_s18 }
 0x692   : > { %p23_p11 = scmp.ge.s32.totalorder %s1893_s20, 4   ;;  %s1897_s18 = smov %s1894_s29 }
 0x694   :  { %25 = sbr.rel (!%p23_p11) target bundleno = 5 (0x5), region = 108 }
 0x69b   :  { %1054 = vsyncpa [#allocation3], 1 }
 0x69c   :  { %1056 = vsyncpa [#allocation3 + $0x1], 1 }
 0x69d   :  { %1057 = vsyncpa [#allocation6], 1 }
 0x69e   :  { %1058 = vsyncpa [#allocation4], 1 }
 0x69f   :  { %1060 = vsyncpa [#allocation4 + $0x1], 1 }

</bundles_post_ra>
